<compile_context>
chip_gen: v5e
topology: v5e:2x2
jax: 0.10.0
libtpu: 0.0.40
codegen_flags: <defaults>
</compile_context>

<pallas_src>
import jax
import jax.numpy as jnp
from jax.experimental import pallas as pl
from jax.experimental.pallas import tpu as pltpu


def _round_up(x, m):
    return ((x + m - 1) // m) * m


def _round_down(x, m):
    return (x // m) * m


# ---------------------------------------------------------------------------
# Kernel
# ---------------------------------------------------------------------------
def kd_kernel(d_ref, h_ref, w1_ref, w2_ref, bg_ref, wed_ref, weh_ref, be_ref,
              out_ref):
    """One [TM, H] row-tile of the fused KD head.

    d_ref  : [TM, H]  out_d rows (bf16)
    h_ref  : [TM, H]  out_h rows (bf16)
    w1_ref : [H, H]   gate weight for out_h   ([in, out], bf16, resident)
    w2_ref : [H, H]   gate weight for out_d   ([in, out], bf16, resident)
    bg_ref : [1, H]   fused gate bias b1 + b2 (f32, resident)
    wed_ref: [H, Qp]  fc_ensemble rows for the out_d' half (bf16, resident)
    weh_ref: [H, Qp]  fc_ensemble rows for the out_h' half (bf16, resident)
    be_ref : [1, Qp]  fc_ensemble bias (f32, resident)
    out_ref: [TM, Qp] ensemble logits (f32)
    """
    d = d_ref[...]                                     # bf16 [TM, H]
    h = h_ref[...]                                     # bf16 [TM, H]

    # theta = sigmoid(out_h @ W1 + out_d @ W2 + (b1 + b2))  -- f32 accumulation
    gate = (jnp.dot(h, w1_ref[...], preferred_element_type=jnp.float32)
            + jnp.dot(d, w2_ref[...], preferred_element_type=jnp.float32)
            + bg_ref[...])
    theta = jax.nn.sigmoid(gate)                       # f32 [TM, H]

    # Per-half gating (no concat, no [TM, 2H] temporaries); back to bf16 for MXU.
    gated_d = (theta * d.astype(jnp.float32)).astype(d.dtype)
    gated_h = ((1.0 - theta) * h.astype(jnp.float32)).astype(h.dtype)

    # fc_ensemble(concat([out_d', out_h'])) as two split K=H matmuls.
    logits = (jnp.dot(gated_d, wed_ref[...], preferred_element_type=jnp.float32)
              + jnp.dot(gated_h, weh_ref[...], preferred_element_type=jnp.float32)
              + be_ref[...])
    out_ref[...] = logits.astype(out_ref.dtype)


# ---------------------------------------------------------------------------
# Parameter init / packing
# ---------------------------------------------------------------------------
def init_params(hidden_dim, num_questions, key):
    """Synthetic parameters with torch-like shapes (weights stored [in, out])."""
    H, Q = hidden_dim, num_questions
    k1, k2, k3, k4, k5, k6 = jax.random.split(key, 6)
    s_h = 1.0 / jnp.sqrt(jnp.float32(H))
    s_e = 1.0 / jnp.sqrt(jnp.float32(2 * H))
    return {
        "w1": jax.random.normal(k1, (H, H), jnp.float32) * s_h,
        "b1": jax.random.normal(k2, (H,), jnp.float32) * s_h,
        "w2": jax.random.normal(k3, (H, H), jnp.float32) * s_h,
        "b2": jax.random.normal(k4, (H,), jnp.float32) * s_h,
        "we": jax.random.normal(k5, (2 * H, Q), jnp.float32) * s_e,
        "be": jax.random.normal(k6, (Q,), jnp.float32) * s_e,
    }


def pack_params(params, hidden_dim, num_questions, *, weight_dtype=jnp.bfloat16):
    """Pack weights for the fused kernel layout (bf16 weights, f32 biases).

    Only the question axis is padded (Q -> Qp, multiple of 128) so the output
    store is lane-dense.  Correctness of that padding relies on BOTH the padded
    we_d/we_h columns and the padded be lanes being zero (padded logits are
    sliced off in the wrapper).
    """
    H, Q = hidden_dim, num_questions
    Qp = _round_up(Q, 128)

    w1 = params["w1"].astype(weight_dtype)                         # [H, H]
    w2 = params["w2"].astype(weight_dtype)                         # [H, H]
    bg = (params["b1"] + params["b2"]).reshape(1, H).astype(jnp.float32)

    we = params["we"]
    we_d = jnp.zeros((H, Qp), weight_dtype).at[:, :Q].set(we[:H].astype(weight_dtype))
    we_h = jnp.zeros((H, Qp), weight_dtype).at[:, :Q].set(we[H:].astype(weight_dtype))
    be = jnp.zeros((1, Qp), jnp.float32).at[0, :Q].set(params["be"])

    return {"w1": w1, "w2": w2, "bg": bg, "we_d": we_d, "we_h": we_h, "be": be,
            "Qp": Qp}


# ---------------------------------------------------------------------------
# VMEM sizing / tile choice (generation-aware)
# ---------------------------------------------------------------------------
def _vmem_capacity_bytes():
    try:
        cap = int(pltpu.get_tpu_info().vmem_capacity_bytes)
        if cap > 0:
            return cap
    except Exception:
        pass
    return 128 << 20          # v5e / v6e default; v7x is 64 MiB per TensorCore


def _kernel_vmem_bytes(tm, H, Qp, act_bufs=2, out_bufs=2):
    act = act_bufs * 2 * tm * H * 2                 # d + h tiles, bf16
    out = out_bufs * tm * Qp * 4                    # f32 output tiles
    wts = (2 * H * H + 2 * H * Qp) * 2              # w1,w2,we_d,we_h bf16, 1 buffer each
    bias = (H + Qp) * 4                             # f32 biases
    tmp = tm * H * 4 + tm * Qp * 4 + 2 * tm * H * 2  # theta(f32), acc(f32), gated(bf16)
    return act + out + wts + bias + tmp


def _choose_tiling(N, H, Qp):
    """Row tile, activation buffer depth and vmem limit sized from real capacity."""
    cap = _vmem_capacity_bytes()
    budget = int(cap * 0.55)                        # leave headroom for Mosaic scratch

    n8 = _round_up(N, 8)
    tm = min(1024, n8)
    # Keep >= 2 grid steps when N allows so "parallel" shards across both
    # TensorCores on v7x (harmless ~0.35 us/step elsewhere).
    if n8 >= 16:
        tm = min(tm, max(8, _round_down(n8 // 2, 8)))
    tm = max(8, _round_up(tm, 8))
    while tm > 8 and _kernel_vmem_bytes(tm, H, Qp) > budget:
        tm = max(8, _round_down(tm // 2, 8))

    # Deepen the activation pipeline when headroom remains (weights are resident,
    # so activations are the only per-step DMA).
    act_bufs = 3 if _kernel_vmem_bytes(tm, H, Qp, act_bufs=3) <= budget else 2

    limit = _kernel_vmem_bytes(tm, H, Qp, act_bufs=act_bufs) + (4 << 20)
    limit = int(min(max(limit, 16 << 20), int(cap * 0.85)))

    # TODO(synk): tile the Q axis (second "parallel" grid dim over we_d/we_h/be
    # and the output) once 2*H*Qp ensemble weights alone exceed the VMEM budget.
    return tm, act_bufs, limit


# ---------------------------------------------------------------------------
# Wrapper
# ---------------------------------------------------------------------------
def kd_module_forward(out_h, out_d, packed, hidden_dim, num_questions):
    B, S, H = out_h.shape
    Q = num_questions
    Qp = packed["Qp"]
    N = B * S

    # bf16 activation views; no pad/concat repack pass over the activations.
    d2 = out_d.reshape(N, H).astype(jnp.bfloat16)
    h2 = out_h.reshape(N, H).astype(jnp.bfloat16)

    tm, act_bufs, vmem_limit = _choose_tiling(N, H, Qp)
    n_pad = _round_up(N, tm)
    if n_pad > N:
        d2 = jnp.pad(d2, ((0, n_pad - N), (0, 0)))
        h2 = jnp.pad(h2, ((0, n_pad - N), (0, 0)))

    n_steps = n_pad // tm
    act_bufs = min(act_bufs, max(2, n_steps))       # no point buffering past the grid
    grid = (n_steps,)

    def act_spec():
        return pl.BlockSpec((tm, H), lambda i: (i, 0),
                            pipeline_mode=pl.Buffered(act_bufs))

    def resident(shape):
        # Constant index_map -> stays in VMEM; single buffer halves resident bytes.
        return pl.BlockSpec(shape, lambda i: (0, 0),
                            pipeline_mode=pl.Buffered(1))

    flops = 4 * n_pad * H * (H + Qp) + n_pad * (4 * H + Qp)
    transcendentals = n_pad * H
    bytes_accessed = (2 * n_pad * H * 2              # bf16 activations in
                      + n_pad * Qp * 4               # f32 logits out
                      + (2 * H * H + 2 * H * Qp) * 2  # bf16 weights
                      + (H + Qp) * 4)                # f32 biases

    logits = pl.pallas_call(
        kd_kernel,
        out_shape=jax.ShapeDtypeStruct((n_pad, Qp), jnp.float32),
        grid=grid,
        in_specs=[
            act_spec(),              # out_d rows (tiled over N)
            act_spec(),              # out_h rows (tiled over N)
            resident((H, H)),        # w1
            resident((H, H)),        # w2
            resident((1, H)),        # fused gate bias b1 + b2
            resident((H, Qp)),       # fc_ensemble (out_d' half)
            resident((H, Qp)),       # fc_ensemble (out_h' half)
            resident((1, Qp)),       # fc_ensemble bias
        ],
        out_specs=pl.BlockSpec((tm, Qp), lambda i: (i, 0)),
        compiler_params=pltpu.CompilerParams(
            dimension_semantics=("parallel",),
            vmem_limit_bytes=vmem_limit,
        ),
        cost_estimate=pl.CostEstimate(
            flops=int(flops),
            transcendentals=int(transcendentals),
            bytes_accessed=int(bytes_accessed),
        ),
    )(d2, h2, packed["w1"], packed["w2"], packed["bg"],
      packed["we_d"], packed["we_h"], packed["be"])

    return logits[:N, :Q].reshape(B, S, Q)


# ---------------------------------------------------------------------------
# Pure-JAX reference (mirrors the PyTorch forward, with the kernel's bf16 rounding)
# ---------------------------------------------------------------------------
def reference_forward(out_h, out_d, params):
    def r(x):  # round through bf16 like the kernel's storage dtype
        return x.astype(jnp.bfloat16).astype(jnp.float32)

    h, d = r(out_h), r(out_d)
    w1, w2, we = r(params["w1"]), r(params["w2"]), r(params["we"])
    theta = jax.nn.sigmoid(h @ w1 + d @ w2 + params["b1"] + params["b2"])
    d_g = r(theta * d)
    h_g = r((1.0 - theta) * h)
    cat = jnp.concatenate([d_g, h_g], axis=-1)
    return cat @ we + params["be"]


if __name__ == "__main__":
    BATCH, SEQ, HIDDEN = 2, 8, 32
    NUM_OF_QUESTIONS = 128   # stand-in for C.NUM_OF_QUESTIONS

    key = jax.random.PRNGKey(0)
    kp, kh, kd = jax.random.split(key, 3)
    params = init_params(HIDDEN, NUM_OF_QUESTIONS, kp)
    packed = pack_params(params, HIDDEN, NUM_OF_QUESTIONS)

    out_h = jax.random.normal(kh, (BATCH, SEQ, HIDDEN), jnp.float32)
    out_d = jax.random.normal(kd, (BATCH, SEQ, HIDDEN), jnp.float32)

    logits = kd_module_forward(out_h, out_d, packed, HIDDEN, NUM_OF_QUESTIONS)
    jax.block_until_ready(logits)

    ref = reference_forward(out_h, out_d, params)
    assert logits.shape == (BATCH, SEQ, NUM_OF_QUESTIONS)
    assert jnp.allclose(logits, ref, atol=1e-2, rtol=1e-2), "mismatch vs reference"

    print("KERNEL_OK")
</pallas_src>

<mosaic_0001>
module attributes {stable_mosaic.version = 11 : i64} {
  func.func @kd_kernel(%arg0: i32, %arg1: memref<8x32xbf16, #tpu.memory_space<vmem>>, %arg2: memref<8x32xbf16, #tpu.memory_space<vmem>>, %arg3: memref<32x32xbf16, #tpu.memory_space<vmem>>, %arg4: memref<32x32xbf16, #tpu.memory_space<vmem>>, %arg5: memref<1x32xf32, #tpu.memory_space<vmem>>, %arg6: memref<32x128xbf16, #tpu.memory_space<vmem>>, %arg7: memref<32x128xbf16, #tpu.memory_space<vmem>>, %arg8: memref<1x128xf32, #tpu.memory_space<vmem>>, %arg9: memref<8x128xf32, #tpu.memory_space<vmem>>) attributes {dimension_semantics = [#tpu.dimension_semantics<parallel>], iteration_bounds = array<i64: 2>, scalar_prefetch = 0 : i64, scratch_operands = 0 : i64, tpu.core_type = #tpu.core_type<tc>, window_params = [{pipeline_mode = #tpu.pipeline_mode<double_buffered>, transform_indices = @transform_0, window_bounds = array<i64: 8, 32>}, {pipeline_mode = #tpu.pipeline_mode<double_buffered>, transform_indices = @transform_1, window_bounds = array<i64: 8, 32>}, {pipeline_mode = #tpu.pipeline_mode<synchronous>, transform_indices = @transform_2, window_bounds = array<i64: 32, 32>}, {pipeline_mode = #tpu.pipeline_mode<synchronous>, transform_indices = @transform_3, window_bounds = array<i64: 32, 32>}, {pipeline_mode = #tpu.pipeline_mode<synchronous>, transform_indices = @transform_4, window_bounds = array<i64: 1, 32>}, {pipeline_mode = #tpu.pipeline_mode<synchronous>, transform_indices = @transform_5, window_bounds = array<i64: 32, 128>}, {pipeline_mode = #tpu.pipeline_mode<synchronous>, transform_indices = @transform_6, window_bounds = array<i64: 32, 128>}, {pipeline_mode = #tpu.pipeline_mode<synchronous>, transform_indices = @transform_7, window_bounds = array<i64: 1, 128>}, {transform_indices = @transform_8, window_bounds = array<i64: 8, 128>}]} {
    %c0 = arith.constant 0 : index
    %c0_0 = arith.constant 0 : index
    %0 = vector.load %arg1[%c0, %c0_0] : memref<8x32xbf16, #tpu.memory_space<vmem>>, vector<8x32xbf16>
    %c0_1 = arith.constant 0 : index
    %c0_2 = arith.constant 0 : index
    %1 = vector.load %arg2[%c0_1, %c0_2] : memref<8x32xbf16, #tpu.memory_space<vmem>>, vector<8x32xbf16>
    %c0_3 = arith.constant 0 : index
    %c0_4 = arith.constant 0 : index
    %2 = vector.load %arg3[%c0_3, %c0_4] : memref<32x32xbf16, #tpu.memory_space<vmem>>, vector<32x32xbf16>
    %cst = arith.constant dense<0.000000e+00> : vector<8x32xf32>
    %3 = tpu.matmul %1, %2, %cst {dimension_numbers = #tpu.dot_dimension_numbers<[1], [0], [0], [1], [0, 0, 1, 1], [], []>} : vector<8x32xbf16>, vector<32x32xbf16>, vector<8x32xf32> -> vector<8x32xf32>
    %c0_5 = arith.constant 0 : index
    %c0_6 = arith.constant 0 : index
    %4 = vector.load %arg4[%c0_5, %c0_6] : memref<32x32xbf16, #tpu.memory_space<vmem>>, vector<32x32xbf16>
    %cst_7 = arith.constant dense<0.000000e+00> : vector<8x32xf32>
    %5 = tpu.matmul %0, %4, %cst_7 {dimension_numbers = #tpu.dot_dimension_numbers<[1], [0], [0], [1], [0, 0, 1, 1], [], []>} : vector<8x32xbf16>, vector<32x32xbf16>, vector<8x32xf32> -> vector<8x32xf32>
    %6 = arith.addf %3, %5 : vector<8x32xf32>
    %c0_8 = arith.constant 0 : index
    %c0_9 = arith.constant 0 : index
    %7 = vector.load %arg5[%c0_8, %c0_9] : memref<1x32xf32, #tpu.memory_space<vmem>>, vector<1x32xf32>
    %8 = vector.broadcast %7 : vector<1x32xf32> to vector<8x32xf32>
    %9 = arith.addf %6, %8 : vector<8x32xf32>
    %10 = arith.negf %9 : vector<8x32xf32>
    %11 = math.exp %10 : vector<8x32xf32>
    %cst_10 = arith.constant 1.000000e+00 : f32
    %12 = vector.broadcast %cst_10 : f32 to vector<8x32xf32>
    %13 = arith.addf %12, %11 : vector<8x32xf32>
    %14 = arith.divf %12, %13 : vector<8x32xf32>
    %15 = arith.extf %0 : vector<8x32xbf16> to vector<8x32xf32>
    %16 = arith.mulf %14, %15 : vector<8x32xf32>
    %17 = arith.truncf %16 : vector<8x32xf32> to vector<8x32xbf16>
    %cst_11 = arith.constant 1.000000e+00 : f32
    %18 = vector.broadcast %cst_11 : f32 to vector<8x32xf32>
    %19 = arith.subf %18, %14 : vector<8x32xf32>
    %20 = arith.extf %1 : vector<8x32xbf16> to vector<8x32xf32>
    %21 = arith.mulf %19, %20 : vector<8x32xf32>
    %22 = arith.truncf %21 : vector<8x32xf32> to vector<8x32xbf16>
    %c0_12 = arith.constant 0 : index
    %c0_13 = arith.constant 0 : index
    %23 = vector.load %arg6[%c0_12, %c0_13] : memref<32x128xbf16, #tpu.memory_space<vmem>>, vector<32x128xbf16>
    %cst_14 = arith.constant dense<0.000000e+00> : vector<8x128xf32>
    %24 = tpu.matmul %17, %23, %cst_14 {dimension_numbers = #tpu.dot_dimension_numbers<[1], [0], [0], [1], [0, 0, 1, 1], [], []>} : vector<8x32xbf16>, vector<32x128xbf16>, vector<8x128xf32> -> vector<8x128xf32>
    %c0_15 = arith.constant 0 : index
    %c0_16 = arith.constant 0 : index
    %25 = vector.load %arg7[%c0_15, %c0_16] : memref<32x128xbf16, #tpu.memory_space<vmem>>, vector<32x128xbf16>
    %cst_17 = arith.constant dense<0.000000e+00> : vector<8x128xf32>
    %26 = tpu.matmul %22, %25, %cst_17 {dimension_numbers = #tpu.dot_dimension_numbers<[1], [0], [0], [1], [0, 0, 1, 1], [], []>} : vector<8x32xbf16>, vector<32x128xbf16>, vector<8x128xf32> -> vector<8x128xf32>
    %27 = arith.addf %24, %26 : vector<8x128xf32>
    %c0_18 = arith.constant 0 : index
    %c0_19 = arith.constant 0 : index
    %28 = vector.load %arg8[%c0_18, %c0_19] : memref<1x128xf32, #tpu.memory_space<vmem>>, vector<1x128xf32>
    %29 = vector.broadcast %28 : vector<1x128xf32> to vector<8x128xf32>
    %30 = arith.addf %27, %29 : vector<8x128xf32>
    %c0_20 = arith.constant 0 : index
    %c0_21 = arith.constant 0 : index
    %31 = vector.load %arg9[%c0_20, %c0_21] : memref<8x128xf32, #tpu.memory_space<vmem>>, vector<8x128xf32>
    tpu.vector_store %arg9[%c0_20, %c0_21], %30 {strides = array<i32>} : memref<8x128xf32, #tpu.memory_space<vmem>>, vector<8x128xf32>,
    return
  }
  func.func @transform_0(%arg0: i32) -> (i32, i32) {
    %c0_i32 = arith.constant 0 : i32
    %c0_i32_0 = arith.constant 0 : i32
    return %arg0, %c0_i32 : i32, i32
  }
  func.func @transform_1(%arg0: i32) -> (i32, i32) {
    %c0_i32 = arith.constant 0 : i32
    %c0_i32_0 = arith.constant 0 : i32
    return %arg0, %c0_i32 : i32, i32
  }
  func.func @transform_2(%arg0: i32) -> (i32, i32) {
    %c0_i32 = arith.constant 0 : i32
    %c0_i32_0 = arith.constant 0 : i32
    %c0_i32_1 = arith.constant 0 : i32
    return %c0_i32, %c0_i32_0 : i32, i32
  }
  func.func @transform_3(%arg0: i32) -> (i32, i32) {
    %c0_i32 = arith.constant 0 : i32
    %c0_i32_0 = arith.constant 0 : i32
    %c0_i32_1 = arith.constant 0 : i32
    return %c0_i32, %c0_i32_0 : i32, i32
  }
  func.func @transform_4(%arg0: i32) -> (i32, i32) {
    %c0_i32 = arith.constant 0 : i32
    %c0_i32_0 = arith.constant 0 : i32
    %c0_i32_1 = arith.constant 0 : i32
    return %c0_i32, %c0_i32_0 : i32, i32
  }
  func.func @transform_5(%arg0: i32) -> (i32, i32) {
    %c0_i32 = arith.constant 0 : i32
    %c0_i32_0 = arith.constant 0 : i32
    %c0_i32_1 = arith.constant 0 : i32
    return %c0_i32, %c0_i32_0 : i32, i32
  }
  func.func @transform_6(%arg0: i32) -> (i32, i32) {
    %c0_i32 = arith.constant 0 : i32
    %c0_i32_0 = arith.constant 0 : i32
    %c0_i32_1 = arith.constant 0 : i32
    return %c0_i32, %c0_i32_0 : i32, i32
  }
  func.func @transform_7(%arg0: i32) -> (i32, i32) {
    %c0_i32 = arith.constant 0 : i32
    %c0_i32_0 = arith.constant 0 : i32
    %c0_i32_1 = arith.constant 0 : i32
    return %c0_i32, %c0_i32_0 : i32, i32
  }
  func.func @transform_8(%arg0: i32) -> (i32, i32) {
    %c0_i32 = arith.constant 0 : i32
    %c0_i32_0 = arith.constant 0 : i32
    return %arg0, %c0_i32 : i32, i32
  }
}

</mosaic_0001>

<bundles_post_ra>
// kernel: tpu_custom_call.1
= control target key start
LH: loop header
LB: loop body
LE: loop exit
PB: predicated region body
PF: predicated region fallthrough
CT: control target
= control target key end

     0   :  { %s1436_s0 = inlined_call_operand.hbm [shape: bf16[16,32], index: 0, kind: input, shape index: {}]   ;;  %s1437_s1 = inlined_call_operand.hbm [shape: bf16[16,32], index: 1, kind: input, shape index: {}]   ;;  %s1438_s2 = inlined_call_operand.hbm [shape: bf16[32,32], index: 2, kind: input, shape index: {}]   ;;  %s1439_s3 = inlined_call_operand.hbm [shape: bf16[32,32], index: 3, kind: input, shape index: {}]   ;;  %s1440_s4 = inlined_call_operand.vmem [shape: f32[1,32], index: 4, kind: input, shape index: {}]   ;;  %s1441_s5 = inlined_call_operand.hbm [shape: bf16[32,128], index: 5, kind: input, shape index: {}]   ;;  %s1442_s6 = inlined_call_operand.hbm [shape: bf16[32,128], index: 6, kind: input, shape index: {}]   ;;  %s1443_s7 = inlined_call_operand.vmem [shape: f32[1,128], index: 7, kind: input, shape index: {}]   ;;  %s1444_s8 = inlined_call_operand.hbm [shape: f32[16,128], index: 8, kind: output, shape index: {}]  }
   0x1   :  { %1448 = sst [smem:[#allocation23_spill]] %s1438_s2 }
   0x2   :  { %1449 = sst [smem:[#allocation24_spill]] %s1439_s3 }
   0x3   :  { %1450 = sst [smem:[#allocation25_spill]] %s1441_s5 }
   0x4   :  { %1451 = sst [smem:[#allocation26_spill]] %s1442_s6 }
   0x5   :  { %13 = vsyncpa [#allocation3], 0 }
   0x6   :  { %15 = vsyncpa [#allocation3 + $0x1], 0 }
   0x7   :  { %16 = vsyncpa [#allocation6], 0 }
   0x8   :  { %18 = vsyncpa [#allocation6 + $0x1], 0 }
   0x9   :  { %19 = vsyncpa [#allocation9], 0 }
   0xa   :  { %20 = vsyncpa [#allocation12], 0 }
   0xb   :  { %21 = vsyncpa [#allocation4], 0 }
   0xc   :  { %23 = vsyncpa [#allocation4 + $0x1], 0  ;;  %s1227_s27 = smov 0   ;;  %s1229_s28 = smov 0  }
   0xd   :  { %s1231_s29 = smov 0   ;;  %s1233_s30 = smov 0  }
   0xe LB: > { %1452 = sst [smem:[#allocation20_spill]] %s1170_s29  ;;  %s1251_s12 = sadd.s32 4294967295, %s1174_s30   ;;  %s1174_s30 = sphi %s1233_s30, %s1467_s30   ;;  %s1170_s29 = sphi %s1231_s29, %s1469_s29   ;;  %s1166_s28 = sphi %s1229_s28, %s1471_s28   ;;  %s1162_s27 = sphi %s1227_s27, %s1470_s27  }
   0xf   : > { %s1453_s2 = sld [smem:[#allocation23_spill]]  ;;  %p745_p0 = scmp.ge.s32.totalorder %s1174_s30, 1 }
  0x10   : > { %p50_p1 = scmp.eq.s32.totalorder %s1251_s12, 0  ;;  %p238_p2 = scmp.lt.s32.totalorder %s1174_s30, 3 }
  0x11   : > { %s1176_s14 = smov [#allocation7]   ;;  %s1455_s3 = sld [smem:[#allocation24_spill]] }
  0x12   : > { %p1256_p3 = pnand %p745_p0, %p238_p2  ;;  %s251_s15 = sshll.u32 %s1176_s14, 4  ;;  %s252_s15 = int_to_ptr.vmem [resolvable:$true] %s251_s15 }
  0x13   : > { %s1457_s5 = sld [smem:[#allocation25_spill]]  ;;  %s1177_s23 = smov [#allocation8]  }
  0x14   : > { %p834_p4 = pneg %p1256_p3  ;;  %s265_s24 = sshll.u32 %s1177_s23, 4  ;;  %s266_s24 = int_to_ptr.vmem [resolvable:$true] %s265_s24 }
  0x15   : > { %s249_s11 = sshll.u32 %s1453_s2, 4  ;;  %s1178_s25 = smov 64   ;;  %s250_s11 = int_to_ptr.hbm [resolvable:$true] %s249_s11 }
  0x16   : > { %p1268_p6 = pnand %p834_p4, %p50_p1  ;;  %s1179_s26 = smov 4  }
  0x17   : > { %s263_s18 = sshll.u32 %s1455_s3, 4  ;;  %s1458_s6 = sld [smem:[#allocation26_spill]]  ;;  %s264_s18 = int_to_ptr.hbm [resolvable:$true] %s263_s18 }
  0x18   : > { %837 = dma.hbm_to_vmem [thread:$0]  (!%p1268_p6), %s250_s11, 256, %s252_s15, [#allocation6], %s1178_s25, %s1178_s25, %s1179_s26  }
  0x19   : > { %s280_s22 = sshll.u32 %s1457_s5, 4  ;;  %s1180_s16 = smov [#allocation10]   ;;  %s281_s22 = int_to_ptr.hbm [resolvable:$true] %s280_s22 }
  0x1a   : > { %840 = dma.hbm_to_vmem [thread:$0]  (!%p1268_p6), %s264_s18, 256, %s266_s24, [#allocation9], %s1178_s25, %s1178_s25, %s1179_s26  }
  0x1b   : > { %s282_s17 = sshll.u32 %s1180_s16, 4  ;;  %s1181_s11 = smov [#allocation11]   ;;  %s283_s17 = int_to_ptr.vmem [resolvable:$true] %s282_s17 }
  0x1c   : > { %843 = dma.hbm_to_vmem [thread:$0]  (!%p1268_p6), %s281_s22, 256, %s283_s17, [#allocation9], %s1178_s25, %s1178_s25, %s1179_s26  }
  0x1d   : > { %s294_s14 = sshll.u32 %s1458_s6, 4  ;;  %s296_s15 = sshll.u32 %s1181_s11, 4  ;;  %s295_s14 = int_to_ptr.hbm [resolvable:$true] %s294_s14  ;;  %s297_s15 = int_to_ptr.vmem [resolvable:$true] %s296_s15 }
  0x1e   : > { %846 = dma.hbm_to_vmem [thread:$0]  (!%p1268_p6), %s295_s14, 256, %s297_s15, [#allocation12], %s1178_s25, %s1178_s25, %s1179_s26  }
  0x1f   : > { %s744_s18 = sadd.s32 4294967294, %s1174_s30   ;;  %s1288_s20 = sadd.s32 1, %s1174_s30  }
  0x20   : > { %1459 = sst [smem:[#allocation21_spill]] %s1288_s20  ;;  %s33_s21 = ssub.s32 %s1174_s30, %s1288_s20 }
  0x21   : > { %s36_s23 = sadd.s32 1, %s1170_s29  ;;  %p34_p7 = scmp.eq.s32.totalorder %s33_s21, 0 }
  0x22   : > { %p43_p8 = scmp.ne.s32.totalorder %s1170_s29, %s1166_s28  ;;  %p44_p9 = scmp.eq.s32.totalorder %s1174_s30, 0 }
  0x23   : > { %p49_p10 = scmp.ne.s32.totalorder %s1166_s28, %s1162_s27  ;;  %p225_p13 = scmp.eq.s32.totalorder %s1251_s12, 1 }
  0x24   : > { %s1299_s22 = scalar_select %p34_p7, %s1170_s29, %s36_s23  }
  0x25   : > { %p1301_p11 = por %p44_p9, %p43_p8  ;;  %p1307_p12 = por %p50_p1, %p49_p10 }
  0x26   : > { %1460 = sst [smem:[#allocation22_spill]] %s1299_s22  ;;  %p231_p0 = scmp.eq.s32.totalorder %s744_s18, 1 }
  0x27   : > { %p862_p2 = scmp.lt.s32.totalorder %s1174_s30, 2  ;;  %s313_s25 = sand.u32 1, %s1170_s29  }
  0x28   : > { %p1314_p4 = por %p225_p13, %p43_p8  ;;  %p1318_p6 = por %p231_p0, %p49_p10 }
  0x29   : > { %s1322_s10 = sshll.u32 %s313_s25, 2  ;;  %s752_s14 = sshll.u32 %s1174_s30, 2 }
  0x2a   : > { %s321_s11 = scalar_lea.hbm %s1436_s0, %s752_s14  ;;  %s317_s15 = scalar_lea.vmem [#allocation2], %s1322_s10 }
  0x2b   : > { %s325_s18 = sshll.u32 %s317_s15, 4  ;;  %s323_s21 = sshll.u32 %s321_s11, 4  ;;  %s326_s18 = int_to_ptr.vmem [resolvable:$true] %s325_s18  ;;  %s324_s21 = int_to_ptr.hbm [resolvable:$true] %s323_s21 }
  0x2c   : > { %p1331_p7 = pnand %p862_p2, %p1301_p11  ;;  %s340_s5 = scalar_lea.hbm %s1437_s1, %s752_s14 }
  0x2d   : > { %s332_s6 = sand.u32 1, %s1174_s30   ;;  %s314_s22 = scalar_lea.sflag [#allocation3], %s313_s25 }
  0x2e   : > { %s1032_s16 = sshra.s32 %s324_s21, 4  ;;  %p1036_p9 = pneg %p1331_p7  ;;  %s1033_s16 = int_to_ptr.hbm [resolvable:$true] %s1032_s16 }
  0x2f   : > { %s1034_s17 = scalar_lea.hbm %s1033_s16, 4  ;;  %s1039_s15 = scalar_lea.hbm %s1436_s0, 8 }
  0x30   : > { %p1035_p8 = scmp.ne.s32.totalorder %s1033_s16, %s1034_s17  ;;  %p1040_p13 = scmp.lt.s32.totalorder %s1033_s16, %s1436_s0 }
  0x31   : > { %p1041_p0 = scmp.lt.s32.totalorder %s1039_s15, %s1034_s17 }
  0x32   : > { %p1037_p10 = pnand %p1036_p9, %p1035_p8 }
  0x33   : > { %p1042_p2 = por %p1041_p0, %p1040_p13 }
  0x34   : > { %p1038_p11 = pneg %p1037_p10 }
  0x36   : > { %p1043_p5 = pnand %p1042_p2, %p1038_p11 }
  0x38   : > { %1046 = shalt.err (!%p1043_p5)
}
  0x39   : > { %850 = dma.hbm_to_vmem [thread:$0]  (!%p1331_p7), %s324_s21, 64, %s326_s18, %s314_s22  }
  0x3a   : > { %s342_s25 = sshll.u32 %s340_s5, 4  ;;  %s336_s14 = scalar_lea.vmem [#allocation5], %s1322_s10  ;;  %s343_s25 = int_to_ptr.hbm [resolvable:$true] %s342_s25 }
  0x3b   : > { %s344_s29 = sshll.u32 %s336_s14, 4  ;;  %s333_s24 = scalar_lea.sflag [#allocation6], %s332_s6  ;;  %s345_s29 = int_to_ptr.vmem [resolvable:$true] %s344_s29 }
  0x3c   : > { %s1062_s11 = sshra.s32 %s343_s25, 4  ;;  %s1069_s15 = scalar_lea.hbm %s1437_s1, 8  ;;  %s1063_s11 = int_to_ptr.hbm [resolvable:$true] %s1062_s11 }
  0x3d   : > { %s1064_s20 = scalar_lea.hbm %s1063_s11, 4  ;;  %p1070_p5 = scmp.lt.s32.totalorder %s1063_s11, %s1437_s1 }
  0x3e   : > { %p1065_p8 = scmp.ne.s32.totalorder %s1063_s11, %s1064_s20  ;;  %p1071_p13 = scmp.lt.s32.totalorder %s1069_s15, %s1064_s20 }
  0x40   : > { %p1067_p10 = pnand %p1065_p8, %p1036_p9  ;;  %p1072_p0 = por %p1071_p13, %p1070_p5 }
  0x42   : > { %p1068_p11 = pneg %p1067_p10 }
  0x44   : > { %p1073_p2 = pnand %p1072_p0, %p1068_p11 }
  0x46   : > { %1076 = shalt.err (!%p1073_p2)
}
  0x47   : > { %853 = dma.hbm_to_vmem [thread:$0]  (!%p1331_p7), %s343_s25, 64, %s345_s29, %s333_s24  }
  0x48   : > { %353 = sbr.rel (%p1256_p3) target bundleno = 399 (0x18f), region = 52  ;;  %s1367_s5 = sand.u32 (!%p1256_p3), 1, %s1166_s28  }
  0x49   : > { %s756_s6 = sshll.u32 (!%p1256_p3), %s1367_s5, 2  ;;  %s356_s10 = scalar_lea.sflag (!%p1256_p3), [#allocation3], %s1367_s5 }
  0x4a   : > { %s359_s18 = scalar_lea.vmem (!%p1256_p3), [#allocation2], %s756_s6 }
  0x4d   : > { %1137 = dma.done.wait (%p1307_p12), %s356_s10, 64  }
  0x4e   : > { %1139 = vsyncadd (%p1307_p12), %s356_s10, 4294967232  ;;  %s365_s29 = sand.u32 1, %s1251_s12   ;;  %s369_s13 = scalar_lea.vmem [#allocation5], %s756_s6 }
  0x4f   : > { %s366_s20 = scalar_lea.sflag [#allocation6], %s365_s29 }
  0x50   : > { %1141 = dma.done.wait (%p1307_p12), %s366_s20, 64  }
  0x51   : > { %1143 = vsyncadd (%p1307_p12), %s366_s20, 4294967232 }
  0x52   : > { %1145 = dma.done.wait (%p50_p1), [#allocation6], 256  }
  0x53   : > { %1147 = vsyncadd (%p50_p1), [#allocation6], 4294967040 }
  0x54   : > { %1149 = dma.done.wait (%p50_p1), [#allocation9], 512  }
  0x55   : > { %1151 = vsyncadd (%p50_p1), [#allocation9], 4294966784 }
  0x56   : > { %1153 = dma.done.wait (%p50_p1), [#allocation12], 256  }
  0x57   : > { %1155 = vsyncadd (%p50_p1), [#allocation12], 4294967040  ;;  %v807_v0 = vld [vmem:[#allocation8 + $0x8] sm:$0xff]  ;;  %v805_v1 = vld [vmem:[#allocation7 + $0x8] sm:$0xff]  ;;  %vm451_vm0 = vcmask 261120   ;;  %s762_s23 = sshll.u32 %s1367_s5, 3 }
  0x58   : > { %v806_v2 = vld [vmem:[#allocation8] sm:$0xff]  ;;  %461 = vmatpush.bf16.msra.mxu0 %v807_v0  ;;  %489 = vmatpush.bf16.msra.mxu1 %v805_v1  ;;  %v804_v3 = vld [vmem:[#allocation7] sm:$0xff]  ;;  %v430_v5 = vld [vmem:[%s369_s13] sm:$0xf]  ;;  %s801_s3 = sshll.u32 %s1251_s12, 3  ;;  %s427_s17 = scalar_lea.vmem [#allocation13], %s762_s23 }
  0x59   : > { %v429_v4 = vld [vmem:[%s359_s18] sm:$0xf]  ;;  %v809_v6 = vld [vmem:[#allocation10 + $0x8] sm:$0xff]  ;;  %v811_v7 = vld [vmem:[#allocation11 + $0x8] sm:$0xff]  ;;  %v524_v29 = vunpack.c.l.bf16 %v430_v5  ;;  %s608_s24 = scalar_lea.hbm %s1444_s8, %s801_s3  ;;  %s610_s15 = sshll.u32 %s427_s17, 4  ;;  %s611_s15 = int_to_ptr.vmem [resolvable:$true] %s610_s15 }
  0x5a   : > { %584 = vmatpush.bf16.msra.mxu3 %v809_v6  ;;  %556 = vmatpush.bf16.msra.mxu2 %v811_v7  ;;  %v808_v8 = vld [vmem:[#allocation10] sm:$0xff]  ;;  %v810_v9 = vld [vmem:[#allocation11] sm:$0xff]  ;;  %v520_v26 = vunpack.c.l.bf16 %v429_v4  ;;  %s612_s2 = sshll.u32 %s608_s24, 4  ;;  %s598_s12 = scalar_lea.sflag [#allocation4], %s1367_s5  ;;  %s613_s2 = int_to_ptr.hbm [resolvable:$true] %s612_s2 }
  0x5b   : > { %v906_v10 = vld [vmem:[%s1440_s4] ss:$0 sm:$0xff]  ;;  %s1106_s22 = sshra.s32 %s613_s2, 4  ;;  %s1112_s29 = scalar_lea.hbm %s1444_s8, 16  ;;  %s1107_s22 = int_to_ptr.hbm [resolvable:$true] %s1106_s22 }
  0x5c   : > { %462 = vmatpush.bf16.msra.mxu0 %v806_v2  ;;  %490 = vmatpush.bf16.msra.mxu1 %v804_v3  ;;  %v907_v38 = vld [vmem:[%s1443_s7] ss:$0 sm:$0xff]  ;;  %s1108_s6 = scalar_lea.hbm %s1107_s22, 8  ;;  %p1113_p7 = scmp.lt.s32.totalorder %s1107_s22, %s1444_s8 }
  0x5d   : > { %p1109_p1 = scmp.ne.s32.totalorder %s1107_s22, %s1108_s6  ;;  %p1114_p9 = scmp.lt.s32.totalorder %s1112_s29, %s1108_s6 }
  0x5e   : > { %585 = vmatpush.bf16.msra.mxu3 %v808_v8  ;;  %557 = vmatpush.bf16.msra.mxu2 %v810_v9 }
  0x5f   : > { %771 = vmatmul.msk.bf16.vlgmr.msra.gmra.mxu0 %vm451_vm0, %v429_v4  ;;  %780 = vmatmul.msk.bf16.vlgmr.msra.gmra.mxu1 %vm451_vm0, %v430_v5  ;;  %p1110_p3 = pnand %p1109_p1, %p1314_p4  ;;  %p1115_p8 = por %p1114_p9, %p1113_p7 }
  0x61   : > { %p1111_p12 = pneg %p1110_p3 }
  0x63   : > { %p1116_p10 = pnand %p1115_p8, %p1111_p12 }
  0xdc   : > { %v464_v11 = vpop.f32.mrf.mxu0  ;;  %v492_v12 = vpop.f32.mrf.mxu1 }
  0xdd   : > { %v493_v13 = vadd.f32 %v492_v12, %v464_v11 }
  0xdf   : > { %v500_v14 = vadd.f32 %v906_v10, %v493_v13 }
  0xe1   : > { %v781_v15 = vmul.f32 -1.442695, %v500_v14 }
  0xe3   : > { %908 = vpow2.f32 %v781_v15 }
  0xe4   : > { %v466_v16 = vpop.f32.mrf.mxu0  ;;  %v494_v17 = vpop.f32.mrf.mxu1 }
  0xe9   : > { %v909_v18 = vpop.eup %908 }
  0xea   : > { %v504_v19 = vadd.f32 1.0, %v909_v18 }
  0xec   : > { %910 = vrcp.f32 %v504_v19  ;;  %v516_v23 = vand.u32 2147483648, %v504_v19  ;;  %v514_v25 = vand.u32 2147483647, %v504_v19  ;;  %vm510_vm2 = vweird.f32 %v504_v19 }
  0xee   : > { %v517_v28 = vor.u32 1.1754944e-38, %v516_v23  ;;  %vm515_vm4 = vcmp.eq.f32.partialorder %v514_v25, 8.507059e+37 }
  0xf2   : > { %v911_v20 = vpop.eup %910 }
  0xf3   : > { %v506_v21 = vmul.f32 %v911_v20, %v504_v19  ;;  %vm511_vm1 = vweird.f32 %v911_v20 }
  0xf4   : > { %vm512_vm3 = vmor %vm510_vm2, %vm511_vm1 }
  0xf5   : > { %v507_v22 = vsub.f32 1.0, %v506_v21 }
  0xf7   : > { %v508_v24 = vmul.f32 %v911_v20, %v507_v22 }
  0xf9   : > { %v509_v27 = vadd.f32 %v911_v20, %v508_v24 }
  0xfb   : > { %v513_v30 = vsel %vm512_vm3, %v911_v20, %v509_v27 }
  0xfc   : > { %v518_v31 = vsel %vm515_vm4, %v517_v28, %v513_v30 }
  0xfd   : > { %v521_v32 = vmul.f32 %v520_v26, %v518_v31  ;;  %v523_v33 = vsub.f32 1.0, %v518_v31 }
  0xff   : > { %v522_v34 = vpack.c.bf16 %v521_v32, %v521_v32  ;;  %v525_v35 = vmul.f32 %v524_v29, %v523_v33 }
 0x101   : > { %799 = vmatmul.msk.bf16.vlgmr.msra.gmra.mxu3 %vm451_vm0, %v522_v34  ;;  %v526_v36 = vpack.c.bf16 %v525_v35, %v525_v35 }
 0x103   : > { %790 = vmatmul.msk.bf16.vlgmr.msra.gmra.mxu2 %vm451_vm0, %v526_v36 }
 0x184   : > { %v587_v37 = vpop.f32.mrf.mxu3 }
 0x186   : > { %v559_v39 = vpop.f32.mrf.mxu2 }
 0x187   : > { %v588_v40 = vadd.f32 %v587_v37, %v559_v39 }
 0x189   : > { %v595_v41 = vadd.f32 %v907_v38, %v588_v40 }
 0x18b   : > { %596 = vst [vmem:[%s427_s17] sm:$0xff] %v595_v41 }
 0x18c   : > { %v589_v42 = vpop.f32.mrf.mxu3 }
 0x18d   : > { %1119 = shalt.err (!%p1116_p10)
}
 0x18e   : > { %832 = dma.vmem_to_hbm [thread:$0]  (%p1314_p4), %s611_s15, 128, %s613_s2, %s598_s12   ;;  %v561_v43 = vpop.f32.mrf.mxu2 }
 0x18f PF: > { %s624_s5 = sand.u32 1, %s1162_s27   ;;  %p1466_p11 = scmp.ge.s32.totalorder %s1174_s30, 2 }
 0x190   : > { %s625_s19 = scalar_lea.sflag [#allocation4], %s624_s5 }
 0x191   : > { %p855_p5 = pnand %p1466_p11, %p1318_p6 }
 0x193   : > { %p856_p13 = pneg %p855_p5 }
 0x195   : > { %1157 = dma.done.wait (%p856_p13), %s625_s19, 128  }
 0x196   : > { %1159 = vsyncadd (%p856_p13), %s625_s19, 4294967168  ;;  %s1467_s30 = sld [smem:[#allocation21_spill]]  ;;  %s1470_s27 = smov %s1166_s28 }
 0x197   : > { %s1468_s21 = sld [smem:[#allocation20_spill]] }
 0x198   : > { %s1469_s29 = sld [smem:[#allocation22_spill]] }
 0x19c   : > { %p26_p0 = scmp.ge.s32.totalorder %s1467_s30, 4  }
 0x19d   : > { %s1471_s28 = smov %s1468_s21 }
 0x19e   :  { %28 = sbr.rel (!%p26_p0) target bundleno = 14 (0xe), region = 126 }
 0x1a3   :  { %631 = vsyncpa [#allocation3], 1 }
 0x1a4   :  { %633 = vsyncpa [#allocation3 + $0x1], 1 }
 0x1a5   :  { %634 = vsyncpa [#allocation6], 1 }
 0x1a6   :  { %636 = vsyncpa [#allocation6 + $0x1], 1 }
 0x1a7   :  { %637 = vsyncpa [#allocation9], 1 }
 0x1a8   :  { %638 = vsyncpa [#allocation12], 1 }
 0x1a9   :  { %639 = vsyncpa [#allocation4], 1 }
 0x1aa   :  { %641 = vsyncpa [#allocation4 + $0x1], 1 }

</bundles_post_ra>
